<compile_context>
chip_gen: v7x
topology: tpu7x:2x2x1
jax: 0.10.0
libtpu: 0.0.40
codegen_flags: <defaults>
</compile_context>

<pallas_src>
import functools

import jax
import jax.numpy as jnp
from jax.experimental import pallas as pl
from jax.experimental.pallas import tpu as pltpu

_LANE = 128
_STAT_ROWS = 8  # sum_e, sum_e2, sum_e*w, sum_e2*w, sum_w, lane_max, lane_expsum, pad
# Finite "minus infinity": exp(_NEG_HUGE - finite) underflows to exactly 0 in f32,
# keeping the blockwise logsumexp free of -inf/NaN corner cases.
_NEG_HUGE = -1e30


def _write_block_stats(out_ref, e, w, z):
    """Per-lane partial statistics of one (br, 128) block -> (8, 128) output block."""
    e2 = e * e
    out_ref[0:1, :] = jnp.sum(e, axis=0, keepdims=True)
    out_ref[1:2, :] = jnp.sum(e2, axis=0, keepdims=True)
    out_ref[2:3, :] = jnp.sum(e * w, axis=0, keepdims=True)
    out_ref[3:4, :] = jnp.sum(e2 * w, axis=0, keepdims=True)
    out_ref[4:5, :] = jnp.sum(w, axis=0, keepdims=True)
    m = jnp.max(z, axis=0, keepdims=True)              # per-lane max of z = -E/T
    out_ref[5:6, :] = m
    out_ref[6:7, :] = jnp.sum(jnp.exp(z - m), axis=0, keepdims=True)
    out_ref[7:8, :] = jnp.zeros((1, _LANE), jnp.float32)


def _ebm_partial_kernel(e_ref, lbl_ref, out_ref, *, batch, block_rows, inv_temp,
                        needs_mask):
    step = pl.program_id(0)
    e = e_ref[...].astype(jnp.float32)          # (br, 128)
    w = lbl_ref[...].astype(jnp.float32)        # (br, 128), labels widened in-kernel

    # Hot path: no per-element masking at all.
    _write_block_stats(out_ref, e, w, e * (-inv_temp))

    if needs_mask:  # trace-time: emitted only when grid coverage > batch
        @pl.when(step == pl.num_programs(0) - 1)
        def _tail():
            # Only the last block can contain padded / out-of-bounds elements;
            # recompute its stats with a global-index mask and overwrite.
            row = jax.lax.broadcasted_iota(jnp.int32, e.shape, 0)
            lane = jax.lax.broadcasted_iota(jnp.int32, e.shape, 1)
            gidx = (step * block_rows + row) * _LANE + lane
            valid = gidx < batch
            e_m = jnp.where(valid, e, 0.0)
            w_m = jnp.where(valid, w, 0.0)
            z_m = jnp.where(valid, e_m * (-inv_temp), _NEG_HUGE)
            _write_block_stats(out_ref, e_m, w_m, z_m)


def _energy_based_loss_ref(energies, labels, temperature=1.0, ml_coeff=1.0, l2_coeff=0.2):
    """Plain-JAX path mirroring the PyTorch module (also the small-batch fallback)."""
    e = jnp.asarray(energies, jnp.float32).reshape(-1)
    lbl = jnp.asarray(labels, jnp.float32).reshape(-1)
    n_pos = jnp.sum(lbl)
    n_neg = jnp.sum(1.0 - lbl)
    pos_mean = jnp.sum(e * lbl) / n_pos
    neg_mean = jnp.sum(e * (1.0 - lbl)) / n_neg
    pos_sq = jnp.sum(e * e * lbl) / n_pos
    neg_sq = jnp.sum(e * e * (1.0 - lbl)) / n_neg
    log_z = jax.scipy.special.logsumexp(-e / temperature)
    nll = pos_mean / temperature + log_z
    contrastive = (pos_mean - neg_mean) / temperature
    return ml_coeff * (nll + contrastive) + l2_coeff * (pos_sq + neg_sq)


def _sublane_align(dtype):
    # native sublane tiling: 8 for 32-bit, 16 for 16-bit, 32 for 8-bit dtypes
    return {1: 32, 2: 16}.get(jnp.dtype(dtype).itemsize, 8)


def energy_based_loss(energies, labels, temperature=1.0, ml_coeff=1.0, l2_coeff=0.2,
                      *, block_rows=2048, use_pallas=None):
    """energies: [B, 1] float, labels: [B] binary. Returns scalar f32 loss."""
    b = int(energies.shape[0])

    # Small reductions are dominated by launch overhead; the fused XLA path wins
    # until the batch is large (review: raise the fallback threshold).
    if use_pallas is None:
        use_pallas = b >= (1 << 17)
    if not use_pallas:
        return _energy_based_loss_ref(energies, labels, temperature, ml_coeff, l2_coeff)

    e_flat = jnp.asarray(energies).reshape(-1)        # (B,) -- free reshape of [B,1]
    lbl_flat = jnp.asarray(labels).reshape(-1)        # native dtype, no host cast pass
    if lbl_flat.dtype == jnp.bool_:
        lbl_flat = lbl_flat.astype(jnp.int8)          # i1 is awkward in Mosaic

    rows = -(-b // _LANE)
    if b % _LANE != 0:
        # Minimal pad to the next lane multiple (only path that needs a copy);
        # when B % 128 == 0 the reshape below is a zero-copy bitcast.
        pad = rows * _LANE - b
        e_flat = jnp.pad(e_flat, (0, pad))
        lbl_flat = jnp.pad(lbl_flat, (0, pad))
    e2d = e_flat.reshape(rows, _LANE)
    lbl2d = lbl_flat.reshape(rows, _LANE)

    row_align = max(_sublane_align(e2d.dtype), _sublane_align(lbl2d.dtype))
    br = max(row_align, (int(block_rows) // row_align) * row_align)
    if br >= rows:
        br = rows                                     # single full-extent block
    grid = -(-rows // br)                             # ragged last block handled in-kernel
    needs_mask = (grid * br * _LANE != b)             # trace-time skip when aligned

    inv_temp = 1.0 / float(temperature)
    kernel = functools.partial(
        _ebm_partial_kernel, batch=b, block_rows=br, inv_temp=inv_temp,
        needs_mask=needs_mask)

    parts = pl.pallas_call(
        kernel,
        grid=(grid,),
        out_shape=jax.ShapeDtypeStruct((grid * _STAT_ROWS, _LANE), jnp.float32),
        in_specs=[
            pl.BlockSpec((br, _LANE), lambda i: (i, 0)),
            pl.BlockSpec((br, _LANE), lambda i: (i, 0)),
        ],
        out_specs=pl.BlockSpec((_STAT_ROWS, _LANE), lambda i: (i, 0)),
        compiler_params=pltpu.CompilerParams(
            dimension_semantics=("parallel",),        # independent chunks -> 2 TCs on v7x
        ),
    )(e2d, lbl2d)

    # Tiny epilogue (fused by XLA): combine per-block, per-lane partials.
    parts = parts.reshape(grid, _STAT_ROWS, _LANE)
    sum_e = jnp.sum(parts[:, 0, :])
    sum_e2 = jnp.sum(parts[:, 1, :])
    sum_ep = jnp.sum(parts[:, 2, :])
    sum_e2p = jnp.sum(parts[:, 3, :])
    n_pos = jnp.sum(parts[:, 4, :])
    m_lane = parts[:, 5, :]
    s_lane = parts[:, 6, :]
    m_g = jnp.max(m_lane)
    log_z = m_g + jnp.log(jnp.sum(jnp.exp(m_lane - m_g) * s_lane))

    # NOTE: like the PyTorch module, an all-positive or all-negative batch
    # divides by zero here (NaN/Inf) -- intentionally left unguarded.
    n_neg = float(b) - n_pos
    pos_mean = sum_ep / n_pos
    neg_mean = (sum_e - sum_ep) / n_neg
    pos_sq_mean = sum_e2p / n_pos
    neg_sq_mean = (sum_e2 - sum_e2p) / n_neg

    nll_loss = pos_mean * inv_temp + log_z
    contrastive_loss = (pos_mean - neg_mean) * inv_temp
    l2_reg = l2_coeff * (pos_sq_mean + neg_sq_mean)
    return ml_coeff * (nll_loss + contrastive_loss) + l2_reg


if __name__ == "__main__":
    key = jax.random.PRNGKey(0)
    k1, k2, k3, k4, k5 = jax.random.split(key, 5)

    # 1) Tiny batch, shapes exactly as the module uses them: [B,1] / [B].
    #    Single block, masked tail (8 valid elements in a 128-lane row).
    b1 = 8
    e1 = jax.random.normal(k1, (b1, 1), dtype=jnp.float32)
    l1 = jnp.array([1, 0, 1, 0, 1, 1, 0, 0], dtype=jnp.int32)
    out1 = jax.block_until_ready(energy_based_loss(e1, l1, use_pallas=True))
    ref1 = _energy_based_loss_ref(e1, l1)
    assert jnp.allclose(out1, ref1, rtol=1e-5, atol=1e-5), (out1, ref1)

    # 2) Lane-aligned batch: zero-copy fast path (no pad, no masking emitted).
    b2 = 1024
    e2 = jax.random.normal(k2, (b2, 1), dtype=jnp.float32)
    l2 = (jax.random.uniform(k3, (b2,)) > 0.5).astype(jnp.int32)
    out2 = jax.block_until_ready(
        energy_based_loss(e2, l2, temperature=1.5, use_pallas=True))
    ref2 = _energy_based_loss_ref(e2, l2, temperature=1.5)
    assert jnp.allclose(out2, ref2, rtol=1e-5, atol=1e-4), (out2, ref2)

    # 3) Ragged batch + multi-block parallel grid: 40 rows, 5 blocks of 8 rows,
    #    tail-only masking, non-unit temperature.
    b3 = 5000
    e3 = jax.random.normal(k4, (b3, 1), dtype=jnp.float32)
    l3 = (jax.random.uniform(k5, (b3,)) > 0.5).astype(jnp.int32)
    out3 = jax.block_until_ready(
        energy_based_loss(e3, l3, temperature=2.0, block_rows=8, use_pallas=True))
    ref3 = _energy_based_loss_ref(e3, l3, temperature=2.0)
    assert jnp.allclose(out3, ref3, rtol=1e-5, atol=1e-4), (out3, ref3)

    print("KERNEL_OK")
</pallas_src>

<mosaic_0001>
module attributes {stable_mosaic.version = 11 : i64} {
  func.func @_ebm_partial_kernel(%arg0: i32, %arg1: memref<1x128xf32, #tpu.memory_space<vmem>>, %arg2: memref<1x128xi32, #tpu.memory_space<vmem>>, %arg3: memref<8x128xf32, #tpu.memory_space<vmem>>) attributes {dimension_semantics = [#tpu.dimension_semantics<parallel>], iteration_bounds = array<i64: 1>, scalar_prefetch = 0 : i64, scratch_operands = 0 : i64, tpu.core_type = #tpu.core_type<tc>, window_params = [{transform_indices = @transform_0, window_bounds = array<i64: 1, 128>}, {transform_indices = @transform_1, window_bounds = array<i64: 1, 128>}, {transform_indices = @transform_2, window_bounds = array<i64: 8, 128>}]} {
    %c0 = arith.constant 0 : index
    %c0_0 = arith.constant 0 : index
    %0 = vector.load %arg1[%c0, %c0_0] : memref<1x128xf32, #tpu.memory_space<vmem>>, vector<1x128xf32>
    %c0_1 = arith.constant 0 : index
    %c0_2 = arith.constant 0 : index
    %1 = vector.load %arg2[%c0_1, %c0_2] : memref<1x128xi32, #tpu.memory_space<vmem>>, vector<1x128xi32>
    %2 = arith.sitofp %1 : vector<1x128xi32> to vector<1x128xf32>
    %cst = arith.constant -1.000000e+00 : f32
    %3 = vector.broadcast %cst : f32 to vector<1x128xf32>
    %4 = arith.mulf %0, %3 : vector<1x128xf32>
    %5 = arith.mulf %0, %0 : vector<1x128xf32>
    %cst_3 = arith.constant dense<0.000000e+00> : vector<128xf32>
    %6 = vector.multi_reduction <add>, %0, %cst_3 [0] : vector<1x128xf32> to vector<128xf32>
    %7 = vector.shape_cast %6 : vector<128xf32> to vector<1x128xf32>
    %c0_4 = arith.constant 0 : index
    %c0_5 = arith.constant 0 : index
    %8 = vector.load %arg3[%c0_4, %c0_5] : memref<8x128xf32, #tpu.memory_space<vmem>>, vector<1x128xf32>
    tpu.vector_store %arg3[%c0_4, %c0_5], %7 {strides = array<i32>} : memref<8x128xf32, #tpu.memory_space<vmem>>, vector<1x128xf32>,
    %cst_6 = arith.constant dense<0.000000e+00> : vector<128xf32>
    %9 = vector.multi_reduction <add>, %5, %cst_6 [0] : vector<1x128xf32> to vector<128xf32>
    %10 = vector.shape_cast %9 : vector<128xf32> to vector<1x128xf32>
    %c1 = arith.constant 1 : index
    %c0_7 = arith.constant 0 : index
    %11 = vector.load %arg3[%c1, %c0_7] : memref<8x128xf32, #tpu.memory_space<vmem>>, vector<1x128xf32>
    tpu.vector_store %arg3[%c1, %c0_7], %10 {strides = array<i32>} : memref<8x128xf32, #tpu.memory_space<vmem>>, vector<1x128xf32>,
    %12 = arith.mulf %0, %2 : vector<1x128xf32>
    %cst_8 = arith.constant dense<0.000000e+00> : vector<128xf32>
    %13 = vector.multi_reduction <add>, %12, %cst_8 [0] : vector<1x128xf32> to vector<128xf32>
    %14 = vector.shape_cast %13 : vector<128xf32> to vector<1x128xf32>
    %c2 = arith.constant 2 : index
    %c0_9 = arith.constant 0 : index
    %15 = vector.load %arg3[%c2, %c0_9] : memref<8x128xf32, #tpu.memory_space<vmem>>, vector<1x128xf32>
    tpu.vector_store %arg3[%c2, %c0_9], %14 {strides = array<i32>} : memref<8x128xf32, #tpu.memory_space<vmem>>, vector<1x128xf32>,
    %16 = arith.mulf %5, %2 : vector<1x128xf32>
    %cst_10 = arith.constant dense<0.000000e+00> : vector<128xf32>
    %17 = vector.multi_reduction <add>, %16, %cst_10 [0] : vector<1x128xf32> to vector<128xf32>
    %18 = vector.shape_cast %17 : vector<128xf32> to vector<1x128xf32>
    %c3 = arith.constant 3 : index
    %c0_11 = arith.constant 0 : index
    %19 = vector.load %arg3[%c3, %c0_11] : memref<8x128xf32, #tpu.memory_space<vmem>>, vector<1x128xf32>
    tpu.vector_store %arg3[%c3, %c0_11], %18 {strides = array<i32>} : memref<8x128xf32, #tpu.memory_space<vmem>>, vector<1x128xf32>,
    %cst_12 = arith.constant dense<0.000000e+00> : vector<128xf32>
    %20 = vector.multi_reduction <add>, %2, %cst_12 [0] : vector<1x128xf32> to vector<128xf32>
    %21 = vector.shape_cast %20 : vector<128xf32> to vector<1x128xf32>
    %c4 = arith.constant 4 : index
    %c0_13 = arith.constant 0 : index
    %22 = vector.load %arg3[%c4, %c0_13] : memref<8x128xf32, #tpu.memory_space<vmem>>, vector<1x128xf32>
    tpu.vector_store %arg3[%c4, %c0_13], %21 {strides = array<i32>} : memref<8x128xf32, #tpu.memory_space<vmem>>, vector<1x128xf32>,
    %cst_14 = arith.constant dense<0xFF800000> : vector<128xf32>
    %23 = vector.multi_reduction <maximumf>, %4, %cst_14 [0] : vector<1x128xf32> to vector<128xf32>
    %24 = vector.shape_cast %23 : vector<128xf32> to vector<1x128xf32>
    %c5 = arith.constant 5 : index
    %c0_15 = arith.constant 0 : index
    %25 = vector.load %arg3[%c5, %c0_15] : memref<8x128xf32, #tpu.memory_space<vmem>>, vector<1x128xf32>
    tpu.vector_store %arg3[%c5, %c0_15], %24 {strides = array<i32>} : memref<8x128xf32, #tpu.memory_space<vmem>>, vector<1x128xf32>,
    %26 = arith.subf %4, %24 : vector<1x128xf32>
    %27 = math.exp %26 : vector<1x128xf32>
    %cst_16 = arith.constant dense<0.000000e+00> : vector<128xf32>
    %28 = vector.multi_reduction <add>, %27, %cst_16 [0] : vector<1x128xf32> to vector<128xf32>
    %29 = vector.shape_cast %28 : vector<128xf32> to vector<1x128xf32>
    %c6 = arith.constant 6 : index
    %c0_17 = arith.constant 0 : index
    %30 = vector.load %arg3[%c6, %c0_17] : memref<8x128xf32, #tpu.memory_space<vmem>>, vector<1x128xf32>
    tpu.vector_store %arg3[%c6, %c0_17], %29 {strides = array<i32>} : memref<8x128xf32, #tpu.memory_space<vmem>>, vector<1x128xf32>,
    %cst_18 = arith.constant 0.000000e+00 : f32
    %31 = vector.broadcast %cst_18 : f32 to vector<1x128xf32>
    %c7 = arith.constant 7 : index
    %c0_19 = arith.constant 0 : index
    %32 = vector.load %arg3[%c7, %c0_19] : memref<8x128xf32, #tpu.memory_space<vmem>>, vector<1x128xf32>
    tpu.vector_store %arg3[%c7, %c0_19], %31 {strides = array<i32>} : memref<8x128xf32, #tpu.memory_space<vmem>>, vector<1x128xf32>,
    %c0_i32 = arith.constant 0 : i32
    %33 = arith.cmpi eq, %arg0, %c0_i32 : i32
    %34 = arith.extui %33 : i1 to i32
    %c0_i32_20 = arith.constant 0 : i32
    %35 = arith.cmpi ne, %34, %c0_i32_20 : i32
    scf.if %35 {
      %36 = tpu.iota {dimensions = array<i32: 0>} : vector<1x128xi32>
      %37 = tpu.iota {dimensions = array<i32: 1>} : vector<1x128xi32>
      %c1_i32 = arith.constant 1 : i32
      %38 = arith.muli %arg0, %c1_i32 : i32
      %39 = vector.broadcast %38 : i32 to vector<1x128xi32>
      %40 = arith.addi %39, %36 : vector<1x128xi32>
      %c128_i32 = arith.constant 128 : i32
      %41 = vector.broadcast %c128_i32 : i32 to vector<1x128xi32>
      %42 = arith.muli %40, %41 : vector<1x128xi32>
      %43 = arith.addi %42, %37 : vector<1x128xi32>
      %c8_i32 = arith.constant 8 : i32
      %44 = vector.broadcast %c8_i32 : i32 to vector<1x128xi32>
      %45 = arith.cmpi slt, %43, %44 : vector<1x128xi32>
      %cst_21 = arith.constant 0.000000e+00 : f32
      %46 = vector.broadcast %cst_21 : f32 to vector<1x128xf32>
      %47 = arith.select %45, %0, %46 : vector<1x128xi1>, vector<1x128xf32>
      %cst_22 = arith.constant 0.000000e+00 : f32
      %48 = vector.broadcast %cst_22 : f32 to vector<1x128xf32>
      %49 = arith.select %45, %2, %48 : vector<1x128xi1>, vector<1x128xf32>
      %cst_23 = arith.constant -1.000000e+00 : f32
      %50 = vector.broadcast %cst_23 : f32 to vector<1x128xf32>
      %51 = arith.mulf %47, %50 : vector<1x128xf32>
      %cst_24 = arith.constant -1.000000e+30 : f32
      %52 = vector.broadcast %cst_24 : f32 to vector<1x128xf32>
      %53 = arith.select %45, %51, %52 : vector<1x128xi1>, vector<1x128xf32>
      %54 = arith.mulf %47, %47 : vector<1x128xf32>
      %cst_25 = arith.constant dense<0.000000e+00> : vector<128xf32>
      %55 = vector.multi_reduction <add>, %47, %cst_25 [0] : vector<1x128xf32> to vector<128xf32>
      %56 = vector.shape_cast %55 : vector<128xf32> to vector<1x128xf32>
      %c0_26 = arith.constant 0 : index
      %c0_27 = arith.constant 0 : index
      %57 = vector.load %arg3[%c0_26, %c0_27] : memref<8x128xf32, #tpu.memory_space<vmem>>, vector<1x128xf32>
      tpu.vector_store %arg3[%c0_26, %c0_27], %56 {strides = array<i32>} : memref<8x128xf32, #tpu.memory_space<vmem>>, vector<1x128xf32>,
      %cst_28 = arith.constant dense<0.000000e+00> : vector<128xf32>
      %58 = vector.multi_reduction <add>, %54, %cst_28 [0] : vector<1x128xf32> to vector<128xf32>
      %59 = vector.shape_cast %58 : vector<128xf32> to vector<1x128xf32>
      %c1_29 = arith.constant 1 : index
      %c0_30 = arith.constant 0 : index
      %60 = vector.load %arg3[%c1_29, %c0_30] : memref<8x128xf32, #tpu.memory_space<vmem>>, vector<1x128xf32>
      tpu.vector_store %arg3[%c1_29, %c0_30], %59 {strides = array<i32>} : memref<8x128xf32, #tpu.memory_space<vmem>>, vector<1x128xf32>,
      %61 = arith.mulf %47, %49 : vector<1x128xf32>
      %cst_31 = arith.constant dense<0.000000e+00> : vector<128xf32>
      %62 = vector.multi_reduction <add>, %61, %cst_31 [0] : vector<1x128xf32> to vector<128xf32>
      %63 = vector.shape_cast %62 : vector<128xf32> to vector<1x128xf32>
      %c2_32 = arith.constant 2 : index
      %c0_33 = arith.constant 0 : index
      %64 = vector.load %arg3[%c2_32, %c0_33] : memref<8x128xf32, #tpu.memory_space<vmem>>, vector<1x128xf32>
      tpu.vector_store %arg3[%c2_32, %c0_33], %63 {strides = array<i32>} : memref<8x128xf32, #tpu.memory_space<vmem>>, vector<1x128xf32>,
      %65 = arith.mulf %54, %49 : vector<1x128xf32>
      %cst_34 = arith.constant dense<0.000000e+00> : vector<128xf32>
      %66 = vector.multi_reduction <add>, %65, %cst_34 [0] : vector<1x128xf32> to vector<128xf32>
      %67 = vector.shape_cast %66 : vector<128xf32> to vector<1x128xf32>
      %c3_35 = arith.constant 3 : index
      %c0_36 = arith.constant 0 : index
      %68 = vector.load %arg3[%c3_35, %c0_36] : memref<8x128xf32, #tpu.memory_space<vmem>>, vector<1x128xf32>
      tpu.vector_store %arg3[%c3_35, %c0_36], %67 {strides = array<i32>} : memref<8x128xf32, #tpu.memory_space<vmem>>, vector<1x128xf32>,
      %cst_37 = arith.constant dense<0.000000e+00> : vector<128xf32>
      %69 = vector.multi_reduction <add>, %49, %cst_37 [0] : vector<1x128xf32> to vector<128xf32>
      %70 = vector.shape_cast %69 : vector<128xf32> to vector<1x128xf32>
      %c4_38 = arith.constant 4 : index
      %c0_39 = arith.constant 0 : index
      %71 = vector.load %arg3[%c4_38, %c0_39] : memref<8x128xf32, #tpu.memory_space<vmem>>, vector<1x128xf32>
      tpu.vector_store %arg3[%c4_38, %c0_39], %70 {strides = array<i32>} : memref<8x128xf32, #tpu.memory_space<vmem>>, vector<1x128xf32>,
      %cst_40 = arith.constant dense<0xFF800000> : vector<128xf32>
      %72 = vector.multi_reduction <maximumf>, %53, %cst_40 [0] : vector<1x128xf32> to vector<128xf32>
      %73 = vector.shape_cast %72 : vector<128xf32> to vector<1x128xf32>
      %c5_41 = arith.constant 5 : index
      %c0_42 = arith.constant 0 : index
      %74 = vector.load %arg3[%c5_41, %c0_42] : memref<8x128xf32, #tpu.memory_space<vmem>>, vector<1x128xf32>
      tpu.vector_store %arg3[%c5_41, %c0_42], %73 {strides = array<i32>} : memref<8x128xf32, #tpu.memory_space<vmem>>, vector<1x128xf32>,
      %75 = arith.subf %53, %73 : vector<1x128xf32>
      %76 = math.exp %75 : vector<1x128xf32>
      %cst_43 = arith.constant dense<0.000000e+00> : vector<128xf32>
      %77 = vector.multi_reduction <add>, %76, %cst_43 [0] : vector<1x128xf32> to vector<128xf32>
      %78 = vector.shape_cast %77 : vector<128xf32> to vector<1x128xf32>
      %c6_44 = arith.constant 6 : index
      %c0_45 = arith.constant 0 : index
      %79 = vector.load %arg3[%c6_44, %c0_45] : memref<8x128xf32, #tpu.memory_space<vmem>>, vector<1x128xf32>
      tpu.vector_store %arg3[%c6_44, %c0_45], %78 {strides = array<i32>} : memref<8x128xf32, #tpu.memory_space<vmem>>, vector<1x128xf32>,
      %cst_46 = arith.constant 0.000000e+00 : f32
      %80 = vector.broadcast %cst_46 : f32 to vector<1x128xf32>
      %c7_47 = arith.constant 7 : index
      %c0_48 = arith.constant 0 : index
      %81 = vector.load %arg3[%c7_47, %c0_48] : memref<8x128xf32, #tpu.memory_space<vmem>>, vector<1x128xf32>
      tpu.vector_store %arg3[%c7_47, %c0_48], %80 {strides = array<i32>} : memref<8x128xf32, #tpu.memory_space<vmem>>, vector<1x128xf32>,
    } else {
    }
    return
  }
  func.func @transform_0(%arg0: i32) -> (i32, i32) {
    %c0_i32 = arith.constant 0 : i32
    %c0_i32_0 = arith.constant 0 : i32
    return %arg0, %c0_i32 : i32, i32
  }
  func.func @transform_1(%arg0: i32) -> (i32, i32) {
    %c0_i32 = arith.constant 0 : i32
    %c0_i32_0 = arith.constant 0 : i32
    return %arg0, %c0_i32 : i32, i32
  }
  func.func @transform_2(%arg0: i32) -> (i32, i32) {
    %c0_i32 = arith.constant 0 : i32
    %c0_i32_0 = arith.constant 0 : i32
    return %arg0, %c0_i32 : i32, i32
  }
}

</mosaic_0001>

<bundles_post_ra>
// kernel: tpu_custom_call.1
= control target key start
LH: loop header
LB: loop body
LE: loop exit
PB: predicated region body
PF: predicated region fallthrough
CT: control target
= control target key end

     0   :  { %7 = vsyncpa [#allocation3], 0  ;;  %s203_s0 = inlined_call_operand.hbm [shape: f32[1,128], index: 0, kind: input, shape index: {}]   ;;  %s204_s1 = inlined_call_operand.vmem [shape: s32[1,128], index: 1, kind: input, shape index: {}]   ;;  %s205_s2 = inlined_call_operand.hbm [shape: f32[8,128], index: 2, kind: output, shape index: {}]  }
   0x1   :  { %8 = vsyncpa [#allocation4], 0  ;;  %s155_s9 = smov [#allocation2]   ;;  %s107_s13 = scalar_lea.hbm %s203_s0, 16 }
   0x2   :  { %s15_s10 = sshll.u32 %s155_s9, 4  ;;  %p108_p0 = scmp.ne.s32.totalorder %s203_s0, %s107_s13  ;;  %s16_s10 = int_to_ptr.vmem [resolvable:$true] %s15_s10 }
   0x3   :  { %p111_p1 = scmp.lt.u32.totalorder %s107_s13, %s203_s0 }
   0x5   :  { %p113_p2 = pnand %p111_p1, %p108_p0 }
   0x7   :  { %116 = shalt.err (!%p113_p2)
}
   0x8   :  { %s117_s18 = scalar_lea.vmem %s16_s10, 16  ;;  %s121_s19 = scalar_lea.vmem %s16_s10, 32 }
   0x9   :  { %p118_p3 = scmp.ne.s32.totalorder %s16_s10, %s117_s18  ;;  %p122_p4 = scmp.lt.s32.totalorder %s16_s10, %s16_s10 }
   0xa   :  { %p123_p5 = scmp.lt.s32.totalorder %s121_s19, %s117_s18 }
   0xc   :  { %p124_p6 = por %p123_p5, %p122_p4 }
   0xe   :  { %p125_p7 = pnand %p124_p6, %p118_p3 }
  0x10   :  { %128 = shalt.err (!%p125_p7)
}
  0x11   :  { %18 = dma.hbm_to_vmem [thread:$0]  %s203_s0, 16, %s16_s10, [#allocation3]  }
  0x12   :  { %151 = dma.done.wait [#allocation3], 16  }
  0x13   :  { %152 = vsyncadd [#allocation3], 4294967280  ;;  %v52_v0 = vlaneseq  ;;  %v156_v1 = vmov 0.0   ;;  %v24_v6 = vld [vmem:[#allocation2] sm:$0x1]  ;;  %s157_s0 = smov [#allocation5]  }
  0x14   :  { %47 = vst [vmem:[#allocation5 + $0x7] sm:$0x1] %v156_v1  ;;  %v25_v7 = vld [vmem:[%s204_s1] sm:$0x1]  ;;  %30 = vst [vmem:[#allocation5] sm:$0x1] %v24_v6  ;;  %v28_v8 = vmul.f32 %v24_v6, %v24_v6 }
  0x15   :  { %84 = vst [vmem:[#allocation5 + $0x7] sm:$0x1] %v156_v1  ;;  %v53_v2 = vshrl.u32 %v52_v0, 7  ;;  %v55_v3 = vand.u32 127, %v52_v0  ;;  %v26_v9 = vcvt.s32.f32 %v25_v7  ;;  %v27_v10 = vmul.f32 -1.0, %v24_v6  ;;  %s91_s1 = sshll.u32 %s157_s0, 4  ;;  %s92_s1 = int_to_ptr.vmem [resolvable:$true] %s91_s1 }
  0x16   :  { %32 = vst [vmem:[#allocation5 + $0x1] sm:$0x1] %v28_v8  ;;  %s129_s24 = scalar_lea.vmem %s92_s1, 128  ;;  %p134_p9 = scmp.lt.s32.totalorder %s92_s1, %s92_s1 }
  0x17   :  { %v58_v4 = vmul.u32 128, %v53_v2  ;;  %v33_v12 = vmul.f32 %v26_v9, %v24_v6  ;;  %40 = vst [vmem:[#allocation5 + $0x4] sm:$0x1] %v26_v9  ;;  %v36_v13 = vmul.f32 %v28_v8, %v26_v9  ;;  %41 = vst [vmem:[#allocation5 + $0x5] sm:$0x1] %v27_v10  ;;  %v42_v14 = vsub.f32 %v27_v10, %v27_v10  ;;  %p130_p8 = scmp.ne.s32.totalorder %s92_s1, %s129_s24  ;;  %p135_p10 = scmp.lt.s32.totalorder %s129_s24, %s129_s24 }
  0x19   :  { %v59_v5 = vadd.s32 %v58_v4, %v55_v3  ;;  %35 = vst [vmem:[#allocation5 + $0x2] sm:$0x1] %v33_v12  ;;  %38 = vst [vmem:[#allocation5 + $0x3] sm:$0x1] %v36_v13  ;;  %v43_v18 = vmul.f32 1.442695, %v42_v14  ;;  %p136_p11 = por %p135_p10, %p134_p9 }
  0x1b   :  { %vm60_vm0 = vcmp.lt.s32.totalorder %v59_v5, 8  ;;  %103 = vpow2.f32 %v43_v18  ;;  %p137_p12 = pnand %p136_p11, %p130_p8 }
  0x1c   :  { %v61_v11 = vsel %vm60_vm0, %v24_v6, 0.0  ;;  %v62_v16 = vsel %vm60_vm0, %v26_v9, 0.0 }
  0x1d   :  { %67 = vst [vmem:[#allocation5] sm:$0x1] %v61_v11  ;;  %v65_v15 = vmul.f32 %v61_v11, %v61_v11  ;;  %v63_v17 = vmul.f32 -1.0, %v61_v11  ;;  %v70_v19 = vmul.f32 %v62_v16, %v61_v11  ;;  %77 = vst [vmem:[#allocation5 + $0x4] sm:$0x1] %v62_v16 }
  0x1f   :  { %69 = vst [vmem:[#allocation5 + $0x1] sm:$0x1] %v65_v15  ;;  %v73_v20 = vmul.f32 %v65_v15, %v62_v16  ;;  %v64_v21 = vsel %vm60_vm0, %v63_v17, -1e+30  ;;  %72 = vst [vmem:[#allocation5 + $0x2] sm:$0x1] %v70_v19 }
  0x20   :  { %78 = vst [vmem:[#allocation5 + $0x5] sm:$0x1] %v64_v21  ;;  %v79_v22 = vsub.f32 %v64_v21, %v64_v21 }
  0x21   :  { %75 = vst [vmem:[#allocation5 + $0x3] sm:$0x1] %v73_v20 }
  0x22   :  { %v80_v23 = vmul.f32 1.442695, %v79_v22 }
  0x24   :  { %105 = vpow2.f32 %v80_v23 }
  0x25   :  { %v104_v24 = vpop.eup %103 }
  0x26   :  { %46 = vst [vmem:[#allocation5 + $0x6] sm:$0x1] %v104_v24 }
  0x2e   :  { %v106_v25 = vpop.eup %105 }
  0x2f   :  { %83 = vst [vmem:[#allocation5 + $0x6] sm:$0x1] %v106_v25 }
  0x30   :  { %140 = shalt.err (!%p137_p12)
}
  0x31   :  { %s141_s27 = scalar_lea.hbm %s205_s2, 128 }
  0x32   :  { %p142_p13 = scmp.ne.s32.totalorder %s205_s2, %s141_s27  ;;  %p145_p0 = scmp.lt.u32.totalorder %s141_s27, %s205_s2 }
  0x34   :  { %p147_p1 = pnand %p145_p0, %p142_p13 }
  0x36   :  { %150 = shalt.err (!%p147_p1)
}
  0x37   :  { %94 = dma.vmem_to_hbm [thread:$0]  %s92_s1, 128, %s205_s2, [#allocation4]  }
  0x38   :  { %153 = dma.done.wait [#allocation4], 128  }
  0x39   :  { %154 = vsyncadd [#allocation4], 4294967168 }
  0x3a   :  { %98 = vsyncpa [#allocation3], 1 }
  0x3b   :  { %99 = vsyncpa [#allocation4], 1 }

</bundles_post_ra>
